<compile_context>
chip_gen: v7x
topology: tpu7x:2x2x1
jax: 0.10.0
libtpu: 0.0.40
codegen_flags: <defaults>
</compile_context>

<pallas_src>
from functools import partial

import jax
import jax.numpy as jnp
from jax.experimental import pallas as pl
from jax.experimental.pallas import tpu as pltpu


LANE = 128


def _round_up(v, m):
    return ((v + m - 1) // m) * m


def _pad2(a, rows, cols):
    return jnp.pad(a, ((0, rows - a.shape[0]), (0, cols - a.shape[1])))


# --------------------------------------------------------------------------
# Kernel: one SAGE layer for a tile of destination nodes.
#   a_ref      [TM, Np]   bf16 edge counts (exact small ints in bf16)
#   invd_ref   [TM, 1]    f32  1/max(deg, 1)
#   x_all_ref  [Np, Fp]   bf16 all node features (needed for aggregation)
#   x_tile_ref [TM, Fp]   bf16 features of this tile's nodes (root term)
#   w_ref      [2*Fp, Fo] bf16 stacked [W_l; W_r]
#   b_ref      [1, Fo]    f32  bias
#   o_ref      [TM, Fo]   layer output (bf16 for hidden layer, f32 for logits)
# --------------------------------------------------------------------------
def _sage_layer_kernel(a_ref, invd_ref, x_all_ref, x_tile_ref, w_ref, b_ref,
                       o_ref, *, activation, num_valid):
    # Mean aggregation: bf16 counts @ bf16 feats on the MXU (f32 acc),
    # then the per-row 1/deg scale on the VPU.
    agg = jnp.dot(a_ref[...], x_all_ref[...],
                  preferred_element_type=jnp.float32)          # [TM, Fp]
    agg = agg * invd_ref[...]                                  # mean

    # Fused linear: [agg | x_self] @ [W_l; W_r]  (single MXU launch per tile).
    cat = jnp.concatenate([agg.astype(jnp.bfloat16), x_tile_ref[...]], axis=1)
    z = jnp.dot(cat, w_ref[...],
                preferred_element_type=jnp.float32) + b_ref[...]   # [TM, Fo]

    if activation == "relu":
        o_ref[...] = jnp.maximum(z, 0.0).astype(o_ref.dtype)
    else:  # "log_softmax" over the first `num_valid` (unpadded) class lanes
        col = jax.lax.broadcasted_iota(jnp.int32, z.shape, 1)
        valid = col < num_valid
        zm = jnp.where(valid, z, -1e30)
        m = jnp.max(zm, axis=1, keepdims=True)
        e = jnp.where(valid, jnp.exp(z - m), 0.0)
        lse = jnp.log(jnp.sum(e, axis=1, keepdims=True))
        o_ref[...] = (z - m - lse).astype(o_ref.dtype)


def _sage_layer(a, inv_deg, feats, w, b, *, row_tile, out_dtype, activation,
                num_valid=0):
    n_pad = a.shape[0]
    f_in = feats.shape[1]
    f_out = w.shape[1]
    grid = (n_pad // row_tile,)

    kernel = partial(_sage_layer_kernel, activation=activation,
                     num_valid=num_valid)

    return pl.pallas_call(
        kernel,
        out_shape=jax.ShapeDtypeStruct((n_pad, f_out), out_dtype),
        grid=grid,
        in_specs=[
            pl.BlockSpec((row_tile, n_pad), lambda i: (i, 0)),   # A row tile
            pl.BlockSpec((row_tile, 1), lambda i: (i, 0)),       # 1/deg
            pl.BlockSpec((n_pad, f_in), lambda i: (0, 0)),       # all feats
            pl.BlockSpec((row_tile, f_in), lambda i: (i, 0)),    # self feats
            pl.BlockSpec((2 * f_in, f_out), lambda i: (0, 0)),   # [W_l; W_r]
            pl.BlockSpec((1, f_out), lambda i: (0, 0)),          # bias
        ],
        out_specs=pl.BlockSpec((row_tile, f_out), lambda i: (i, 0)),
        compiler_params=pltpu.CompilerParams(
            dimension_semantics=("parallel",),
            vmem_limit_bytes=32 * 1024 * 1024,
        ),
    )(a, inv_deg, feats, feats, w, b)


def graphsage_forward(x, edge_index, params, *, row_tile=16):
    """x: [N, Fin] f32, edge_index: [2, E] int32 (row0=src, row1=dst)."""
    w1l, w1r, b1, w2l, w2r, b2 = params
    n, fin = x.shape
    hid = w1l.shape[1]
    ncls = w2l.shape[1]

    fp = _round_up(fin, LANE)
    hp = _round_up(hid, LANE)
    cp = _round_up(ncls, LANE)
    n_pad = _round_up(n, row_tile)

    # Dense adjacency of edge counts (duplicates preserved, matching
    # scatter_mean). Small-int counts are exact in bf16; the row-normalizing
    # 1/deg stays f32 and is applied after the matmul inside the kernel.
    src, dst = edge_index[0], edge_index[1]
    adj = jnp.zeros((n_pad, n_pad), jnp.float32).at[dst, src].add(1.0)
    deg = jnp.sum(adj, axis=1, keepdims=True)
    inv_deg = (1.0 / jnp.maximum(deg, 1.0)).astype(jnp.float32)   # [n_pad, 1]
    a_bf16 = adj.astype(jnp.bfloat16)

    xp = _pad2(x, n_pad, fp).astype(jnp.bfloat16)

    # Stack [W_l; W_r] along K once (wrapper-side), pad to lane widths, bf16.
    w1 = jnp.concatenate([_pad2(w1l, fp, hp), _pad2(w1r, fp, hp)],
                         axis=0).astype(jnp.bfloat16)            # [2*fp, hp]
    b1p = _pad2(b1, 1, hp).astype(jnp.float32)
    w2 = jnp.concatenate([_pad2(w2l, hp, cp), _pad2(w2r, hp, cp)],
                         axis=0).astype(jnp.bfloat16)            # [2*hp, cp]
    b2p = _pad2(b2, 1, cp).astype(jnp.float32)

    # Layer 1: SAGEConv + ReLU (hidden kept in bf16 for layer 2's matmuls).
    h = _sage_layer(a_bf16, inv_deg, xp, w1, b1p, row_tile=row_tile,
                    out_dtype=jnp.bfloat16, activation="relu")
    # Layer 2: SAGEConv + log_softmax over the real class lanes.
    out = _sage_layer(a_bf16, inv_deg, h, w2, b2p, row_tile=row_tile,
                      out_dtype=jnp.float32, activation="log_softmax",
                      num_valid=ncls)
    return out[:n, :ncls]


def graphsage_reference(x, edge_index, params):
    n = x.shape[0]
    src, dst = edge_index[0], edge_index[1]
    adj = jnp.zeros((n, n), jnp.float32).at[dst, src].add(1.0)
    a = adj / jnp.maximum(jnp.sum(adj, axis=1, keepdims=True), 1.0)
    w1l, w1r, b1, w2l, w2r, b2 = params
    h = jnp.maximum(a @ x @ w1l + x @ w1r + b1, 0.0)
    z = a @ h @ w2l + h @ w2r + b2
    return jax.nn.log_softmax(z, axis=1)


def init_params(key, in_channels, hidden_channels, out_channels):
    k1, k2, k3, k4 = jax.random.split(key, 4)
    s1 = 1.0 / jnp.sqrt(in_channels)
    s2 = 1.0 / jnp.sqrt(hidden_channels)
    w1l = jax.random.uniform(k1, (in_channels, hidden_channels), jnp.float32,
                             -s1, s1)
    w1r = jax.random.uniform(k2, (in_channels, hidden_channels), jnp.float32,
                             -s1, s1)
    b1 = jnp.zeros((1, hidden_channels), jnp.float32)
    w2l = jax.random.uniform(k3, (hidden_channels, out_channels), jnp.float32,
                             -s2, s2)
    w2r = jax.random.uniform(k4, (hidden_channels, out_channels), jnp.float32,
                             -s2, s2)
    b2 = jnp.zeros((1, out_channels), jnp.float32)
    return (w1l, w1r, b1, w2l, w2r, b2)


if __name__ == "__main__":
    key = jax.random.PRNGKey(0)
    kx, ke, kp = jax.random.split(key, 3)

    num_nodes = 32
    in_channels = 8
    hidden_channels = 32
    out_channels = 8
    num_edges = 96

    x = jax.random.normal(kx, (num_nodes, in_channels), jnp.float32)
    edge_index = jax.random.randint(ke, (2, num_edges), 0, num_nodes,
                                    dtype=jnp.int32)
    params = init_params(kp, in_channels, hidden_channels, out_channels)

    out = graphsage_forward(x, edge_index, params)
    out = jax.block_until_ready(out)

    assert out.shape == (num_nodes, out_channels)
    # log_softmax rows must exponentiate-sum to ~1
    assert bool(jnp.all(jnp.abs(jnp.sum(jnp.exp(out), axis=1) - 1.0) < 1e-4))
    # matches the f32 reference up to bf16 matmul error
    ref = graphsage_reference(x, edge_index, params)
    assert bool(jnp.allclose(out, ref, atol=0.1))
    print("KERNEL_OK")
</pallas_src>

<mosaic_0001>
module attributes {stable_mosaic.version = 11 : i64} {
  func.func @_sage_layer_kernel(%arg0: i32, %arg1: memref<16x32xbf16, #tpu.memory_space<vmem>>, %arg2: memref<16x1xf32, #tpu.memory_space<vmem>>, %arg3: memref<32x128xbf16, #tpu.memory_space<vmem>>, %arg4: memref<16x128xbf16, #tpu.memory_space<vmem>>, %arg5: memref<256x128xbf16, #tpu.memory_space<vmem>>, %arg6: memref<1x128xf32, #tpu.memory_space<vmem>>, %arg7: memref<16x128xbf16, #tpu.memory_space<vmem>>) attributes {dimension_semantics = [#tpu.dimension_semantics<parallel>], iteration_bounds = array<i64: 2>, scalar_prefetch = 0 : i64, scratch_operands = 0 : i64, tpu.core_type = #tpu.core_type<tc>, window_params = [{transform_indices = @transform_0, window_bounds = array<i64: 16, 32>}, {transform_indices = @transform_1, window_bounds = array<i64: 16, 1>}, {pipeline_mode = #tpu.pipeline_mode<synchronous>, transform_indices = @transform_2, window_bounds = array<i64: 32, 128>}, {transform_indices = @transform_3, window_bounds = array<i64: 16, 128>}, {pipeline_mode = #tpu.pipeline_mode<synchronous>, transform_indices = @transform_4, window_bounds = array<i64: 256, 128>}, {pipeline_mode = #tpu.pipeline_mode<synchronous>, transform_indices = @transform_5, window_bounds = array<i64: 1, 128>}, {transform_indices = @transform_6, window_bounds = array<i64: 16, 128>}]} {
    %c0 = arith.constant 0 : index
    %c0_0 = arith.constant 0 : index
    %0 = vector.load %arg1[%c0, %c0_0] : memref<16x32xbf16, #tpu.memory_space<vmem>>, vector<16x32xbf16>
    %c0_1 = arith.constant 0 : index
    %c0_2 = arith.constant 0 : index
    %1 = vector.load %arg3[%c0_1, %c0_2] : memref<32x128xbf16, #tpu.memory_space<vmem>>, vector<32x128xbf16>
    %cst = arith.constant dense<0.000000e+00> : vector<16x128xf32>
    %2 = tpu.matmul %0, %1, %cst {dimension_numbers = #tpu.dot_dimension_numbers<[1], [0], [0], [1], [0, 0, 1, 1], [], []>} : vector<16x32xbf16>, vector<32x128xbf16>, vector<16x128xf32> -> vector<16x128xf32>
    %c0_3 = arith.constant 0 : index
    %c0_4 = arith.constant 0 : index
    %3 = vector.load %arg2[%c0_3, %c0_4] : memref<16x1xf32, #tpu.memory_space<vmem>>, vector<16x1xf32>
    %4 = vector.broadcast %3 : vector<16x1xf32> to vector<16x128xf32>
    %5 = arith.mulf %2, %4 : vector<16x128xf32>
    %6 = arith.truncf %5 : vector<16x128xf32> to vector<16x128xbf16>
    %c0_5 = arith.constant 0 : index
    %c0_6 = arith.constant 0 : index
    %7 = vector.load %arg4[%c0_5, %c0_6] : memref<16x128xbf16, #tpu.memory_space<vmem>>, vector<16x128xbf16>
    %8 = tpu.concatenate %6, %7 in 1 : vector<16x128xbf16>, vector<16x128xbf16> -> vector<16x256xbf16>
    %c0_7 = arith.constant 0 : index
    %c0_8 = arith.constant 0 : index
    %9 = vector.load %arg5[%c0_7, %c0_8] : memref<256x128xbf16, #tpu.memory_space<vmem>>, vector<256x128xbf16>
    %cst_9 = arith.constant dense<0.000000e+00> : vector<16x128xf32>
    %10 = tpu.matmul %8, %9, %cst_9 {dimension_numbers = #tpu.dot_dimension_numbers<[1], [0], [0], [1], [0, 0, 1, 1], [], []>} : vector<16x256xbf16>, vector<256x128xbf16>, vector<16x128xf32> -> vector<16x128xf32>
    %c0_10 = arith.constant 0 : index
    %c0_11 = arith.constant 0 : index
    %11 = vector.load %arg6[%c0_10, %c0_11] : memref<1x128xf32, #tpu.memory_space<vmem>>, vector<1x128xf32>
    %12 = vector.broadcast %11 : vector<1x128xf32> to vector<16x128xf32>
    %13 = arith.addf %10, %12 : vector<16x128xf32>
    %cst_12 = arith.constant 0.000000e+00 : f32
    %14 = vector.broadcast %cst_12 : f32 to vector<16x128xf32>
    %15 = arith.maximumf %13, %14 : vector<16x128xf32>
    %16 = arith.truncf %15 : vector<16x128xf32> to vector<16x128xbf16>
    %c0_13 = arith.constant 0 : index
    %c0_14 = arith.constant 0 : index
    %17 = vector.load %arg7[%c0_13, %c0_14] : memref<16x128xbf16, #tpu.memory_space<vmem>>, vector<16x128xbf16>
    tpu.vector_store %arg7[%c0_13, %c0_14], %16 {strides = array<i32>} : memref<16x128xbf16, #tpu.memory_space<vmem>>, vector<16x128xbf16>,
    return
  }
  func.func @transform_0(%arg0: i32) -> (i32, i32) {
    %c0_i32 = arith.constant 0 : i32
    %c0_i32_0 = arith.constant 0 : i32
    return %arg0, %c0_i32 : i32, i32
  }
  func.func @transform_1(%arg0: i32) -> (i32, i32) {
    %c0_i32 = arith.constant 0 : i32
    %c0_i32_0 = arith.constant 0 : i32
    return %arg0, %c0_i32 : i32, i32
  }
  func.func @transform_2(%arg0: i32) -> (i32, i32) {
    %c0_i32 = arith.constant 0 : i32
    %c0_i32_0 = arith.constant 0 : i32
    %c0_i32_1 = arith.constant 0 : i32
    return %c0_i32, %c0_i32_0 : i32, i32
  }
  func.func @transform_3(%arg0: i32) -> (i32, i32) {
    %c0_i32 = arith.constant 0 : i32
    %c0_i32_0 = arith.constant 0 : i32
    return %arg0, %c0_i32 : i32, i32
  }
  func.func @transform_4(%arg0: i32) -> (i32, i32) {
    %c0_i32 = arith.constant 0 : i32
    %c0_i32_0 = arith.constant 0 : i32
    %c0_i32_1 = arith.constant 0 : i32
    return %c0_i32, %c0_i32_0 : i32, i32
  }
  func.func @transform_5(%arg0: i32) -> (i32, i32) {
    %c0_i32 = arith.constant 0 : i32
    %c0_i32_0 = arith.constant 0 : i32
    %c0_i32_1 = arith.constant 0 : i32
    return %c0_i32, %c0_i32_0 : i32, i32
  }
  func.func @transform_6(%arg0: i32) -> (i32, i32) {
    %c0_i32 = arith.constant 0 : i32
    %c0_i32_0 = arith.constant 0 : i32
    return %arg0, %c0_i32 : i32, i32
  }
}

</mosaic_0001>

<bundles_post_ra>
// kernel: tpu_custom_call.1
= control target key start
LH: loop header
LB: loop body
LE: loop exit
PB: predicated region body
PF: predicated region fallthrough
CT: control target
= control target key end

     0   :  { %11 = vsyncpa [#allocation3], 0  ;;  %s1308_s0 = inlined_call_operand.vmem [shape: bf16[32,32], index: 0, kind: input, shape index: {}]   ;;  %s1309_s1 = inlined_call_operand.vmem [shape: f32[32,1], index: 1, kind: input, shape index: {}]   ;;  %s1310_s2 = inlined_call_operand.vmem [shape: bf16[32,128], index: 2, kind: input, shape index: {}]   ;;  %s1311_s3 = inlined_call_operand.hbm [shape: bf16[32,128], index: 3, kind: input, shape index: {}]   ;;  %s1312_s4 = inlined_call_operand.hbm [shape: bf16[256,128], index: 4, kind: input, shape index: {}]   ;;  %s1313_s5 = inlined_call_operand.vmem [shape: f32[1,128], index: 5, kind: input, shape index: {}]   ;;  %s1314_s6 = inlined_call_operand.hbm [shape: bf16[32,128], index: 6, kind: output, shape index: {}]  }
   0x1   :  { %13 = vsyncpa [#allocation3 + $0x1], 0 }
   0x2   :  { %14 = vsyncpa [#allocation6], 0 }
   0x3   :  { %15 = vsyncpa [#allocation4], 0 }
   0x4   :  { %17 = vsyncpa [#allocation4 + $0x1], 0  ;;  %s1078_s21 = smov 0   ;;  %s1080_s22 = smov 0  }
   0x5   :  { %s1082_s23 = smov 0   ;;  %s1084_s24 = smov 0  }
   0x6 LB: > { %s1099_s25 = sadd.s32 4294967295, %s1031_s24   ;;  %s732_s26 = sadd.s32 4294967294, %s1031_s24   ;;  %s1031_s24 = sphi %s1084_s24, %s1336_s24   ;;  %s1027_s23 = sphi %s1082_s23, %s1335_s23   ;;  %s1023_s22 = sphi %s1080_s22, %s1334_s22   ;;  %s1019_s21 = sphi %s1078_s21, %s1333_s21  }
   0x7   : > { %p116_p0 = scmp.ne.s32.totalorder %s1023_s22, %s1019_s21  ;;  %p1315_p1 = scmp.eq.s32.totalorder %s1099_s25, 0 }
   0x8   : > { %p188_p3 = scmp.eq.s32.totalorder %s732_s26, 1  ;;  %p733_p5 = scmp.ge.s32.totalorder %s1031_s24, 1 }
   0x9   : > { %p1108_p4 = por %p1315_p1, %p116_p0  ;;  %p195_p7 = scmp.lt.s32.totalorder %s1031_s24, 3 }
   0xa   : > { %p1113_p6 = por %p188_p3, %p116_p0  ;;  %s1033_s30 = smov [#allocation5]  }
   0xb   : > { %s1319_s27 = scalar_select %p1108_p4, 1, 0 }
   0xc   : > { %s1320_s28 = scalar_select %p1113_p6, 1, 0 }
   0xd   : > { %p1118_p8 = pnand %p733_p5, %p195_p7  ;;  %s210_s7 = sshll.u32 %s1033_s30, 4  ;;  %s1122_s7 = int_to_ptr.vmem [resolvable:$true] %s210_s7 }
   0xe   : > { %s1134_s9 = sadd.s32 1, %s1031_s24   ;;  %s103_s10 = sadd.s32 1, %s1027_s23 }
   0xf   : > { %s1321_s29 = scalar_select %p1118_p8, 1, 0 }
  0x10   : > { %p826_p9 = pneg %p1118_p8  ;;  %s100_s11 = ssub.s32 %s1031_s24, %s1134_s9 }
  0x11   : > { %s903_s14 = scalar_lea.hbm %s1312_s4, 2048 }
  0x12   : > { %p1129_p11 = pnand %p826_p9, %p1315_p1  ;;  %p904_p12 = scmp.ne.s32.totalorder %s1312_s4, %s903_s14 }
  0x13   : > { %p910_p5 = scmp.lt.u32.totalorder %s903_s14, %s1312_s4 }
  0x14   : > { %p905_p13 = pneg %p1129_p11 }
  0x16   : > { %p906_p0 = pnand %p905_p13, %p904_p12 }
  0x18   : > { %p907_p3 = pneg %p906_p0 }
  0x1a   : > { %p912_p7 = pnand %p910_p5, %p907_p3 }
  0x1c   : > { %915 = shalt.err (!%p912_p7)
}
  0x1d   : > { %s916_s19 = scalar_lea.vmem %s1122_s7, 2048  ;;  %p924_p2 = scmp.lt.s32.totalorder %s1122_s7, %s1122_s7 }
  0x1e   : > { %p917_p9 = scmp.ne.s32.totalorder %s1122_s7, %s916_s19  ;;  %p925_p6 = scmp.lt.s32.totalorder %s916_s19, %s916_s19 }
  0x20   : > { %p919_p10 = pnand %p917_p9, %p905_p13  ;;  %p926_p4 = por %p925_p6, %p924_p2 }
  0x22   : > { %p920_p1 = pneg %p919_p10 }
  0x24   : > { %p927_p8 = pnand %p926_p4, %p920_p1 }
  0x26   : > { %930 = shalt.err (!%p927_p8)
}
  0x27   : > { %s1034_s20 = smov 64   ;;  %s1035_s26 = smov 4  }
  0x28   : > { %829 = dma.hbm_to_vmem [thread:$0]  (!%p1129_p11), %s1312_s4, 2048, %s1122_s7, [#allocation6], %s1034_s20, %s1034_s20, %s1035_s26  }
  0x29   : > { %p101_p1 = scmp.eq.s32.totalorder %s100_s11, 0  ;;  %p110_p2 = scmp.ne.s32.totalorder %s1027_s23, %s1023_s22 }
  0x2a   : > { %p111_p4 = scmp.eq.s32.totalorder %s1031_s24, 0  ;;  %p839_p6 = scmp.lt.s32.totalorder %s1031_s24, 2 }
  0x2b   : > { %s1168_s13 = scalar_select %p101_p1, %s1027_s23, %s103_s10  }
  0x2c   : > { %p112_p8 = por %p111_p4, %p110_p2  ;;  %p1323_p10 = scmp.eq.s32.totalorder %s1099_s25, 1 }
  0x2d   : > { %s245_s8 = sand.u32 1, %s1027_s23   ;;  %s776_s15 = sshll.u32 %s1031_s24, 7 }
  0x2e   : > { %p1172_p12 = por %p1323_p10, %p110_p2  ;;  %s736_s16 = sshll.u32 %s245_s8, 3 }
  0x2f   : > { %s1181_s19 = scalar_lea.hbm %s1311_s3, %s776_s15  ;;  %s249_s7 = scalar_lea.vmem [#allocation2], %s736_s16 }
  0x30   : > { %s256_s10 = sshll.u32 %s249_s7, 4  ;;  %p1183_p11 = pnand %p839_p6, %p112_p8  ;;  %s1187_s10 = int_to_ptr.vmem [resolvable:$true] %s256_s10 }
  0x31   : > { %s1189_s30 = scalar_lea.sflag [#allocation3], %s245_s8  ;;  %s931_s12 = scalar_lea.hbm %s1181_s19, 128 }
  0x32   : > { %p932_p13 = scmp.ne.s32.totalorder %s1181_s19, %s931_s12  ;;  %p933_p0 = pneg %p1183_p11 }
  0x33   : > { %s936_s17 = scalar_lea.hbm %s1311_s3, 256  ;;  %p937_p7 = scmp.lt.u32.totalorder %s1181_s19, %s1311_s3 }
  0x34   : > { %p934_p3 = pnand %p933_p0, %p932_p13  ;;  %p938_p9 = scmp.lt.u32.totalorder %s936_s17, %s931_s12 }
  0x35   : > { %p940_p2 = scmp.lt.u32.totalorder %s931_s12, %s1181_s19 }
  0x36   : > { %p935_p5 = pneg %p934_p3  ;;  %p939_p1 = por %p938_p9, %p937_p7 }
  0x38   : > { %p941_p4 = por %p940_p2, %p939_p1 }
  0x3a   : > { %p942_p6 = pnand %p941_p4, %p935_p5 }
  0x3c   : > { %945 = shalt.err (!%p942_p6)
}
  0x3d   : > { %s946_s8 = scalar_lea.vmem %s1187_s10, 128  ;;  %s1036_s15 = smov [#allocation2]  }
  0x3e   : > { %p947_p8 = scmp.ne.s32.totalorder %s1187_s10, %s946_s8  ;;  %s951_s16 = sshll.u32 %s1036_s15, 4  ;;  %s952_s16 = int_to_ptr.vmem [resolvable:$false] %s951_s16 }
  0x3f   : > { %s953_s18 = scalar_lea.vmem %s952_s16, 256  ;;  %p954_p3 = scmp.lt.s32.totalorder %s1187_s10, %s952_s16 }
  0x40   : > { %p949_p10 = pnand %p947_p8, %p933_p0  ;;  %p955_p7 = scmp.lt.s32.totalorder %s953_s18, %s946_s8 }
  0x42   : > { %p950_p13 = pneg %p949_p10  ;;  %p956_p9 = por %p955_p7, %p954_p3 }
  0x44   : > { %p957_p1 = pnand %p956_p9, %p950_p13 }
  0x46   : > { %960 = shalt.err (!%p957_p1)
}
  0x47   : > { %833 = dma.hbm_to_vmem [thread:$0]  (!%p1183_p11), %s1181_s19, 128, %s1187_s10, %s1189_s30, %s1034_s20, %s1034_s20, %s1035_s26  }
  0x48   : > { %p1326_p0 = scmp.ne.s32.totalorder %s1321_s29, 0 }
  0x49   : > { %s1223_s12 = sand.u32 (!%p1326_p0), 1, %s1023_s22   ;;  %p1327_p5 = scmp.ne.s32.totalorder (!%p1326_p0), %s1319_s27, 0 }
  0x4a   : > { %268 = sbr.rel (%p1326_p0) target bundleno = 550 (0x226), region = 44  ;;  %s1318_s17 = sshll.u32 (!%p1326_p0), %s1223_s12, 3 }
  0x4b   : > { %s271_s7 = scalar_lea.sflag (!%p1326_p0), [#allocation3], %s1223_s12  ;;  %s1229_s11 = scalar_lea.vmem (!%p1326_p0), [#allocation2], %s1318_s17 }
  0x51   : > { %1006 = dma.done.wait (%p1327_p5), %s271_s7, 128  }
  0x52   : > { %1008 = vsyncadd (%p1327_p5), %s271_s7, 4294967168  ;;  %p1328_p11 = scmp.eq.s32.totalorder %s1099_s25, 0 }
  0x54   : > { %1010 = dma.done.wait (%p1328_p11), [#allocation6], 2048   ;;  %p1329_p2 = pmov %p1328_p11 }
  0x55   : > { %s743_s29 = sshll.u32 %s1099_s25, 1  ;;  %v1037_v0 = vmov 0.0   ;;  %vm1038_vm0 = vmmov 0   ;;  %v1039_v1 = vmov 0   ;;  %v883_v2 = vld [vmem:[%s1310_s2] sm:$0xff]   ;;  %v884_v3 = vld [vmem:[%s1310_s2 + $0x8] sm:$0xff]  }
  0x56   : > { %1012 = vsyncadd (%p1329_p2), [#allocation6], 4294965248  ;;  %810 = vmatprep.subr.bf16.mxu0 %v1037_v0  ;;  %814 = vmatprep.mubr.msk.bf16.mxu0 %vm1038_vm0, %v1037_v0  ;;  %p318_p4 = scmp.lt.s32.totalorder %s743_s29, 3  ;;  %v886_v7 = vld [vmem:[#allocation5 + $0x40] sm:$0xff]   ;;  %vm355_vm1 = vcmask 261120   ;;  %v888_v9 = vld [vmem:[#allocation5 + $0x48] sm:$0xff]  }
  0x57   : > { %882 = vset.pattern.permute.xlu0 %v1039_v1  ;;  %811 = vmatpush3.bf16.msra.mxu0 %v883_v2  ;;  %v887_v8 = vld [vmem:[#allocation5] sm:$0xff]   ;;  %v889_v10 = vld [vmem:[#allocation5 + $0x8] sm:$0xff]   ;;  %v890_v11 = vld [vmem:[#allocation5 + $0x50] sm:$0xff]  }
  0x58   : > { %s1338_s29 = smov (!%p318_p4, %s743_s29), 3  ;;  %812 = vmatprep.subr.bf16.mxu0 %v1037_v0  ;;  %788 = vmatprep.subr.bf16.mxu1 %v886_v7  ;;  %v891_v12 = vld [vmem:[#allocation5 + $0x10] sm:$0xff]   ;;  %v892_v13 = vld [vmem:[#allocation5 + $0x58] sm:$0xff]   ;;  %v894_v15 = vld [vmem:[#allocation5 + $0x60] sm:$0xff]  }
  0x59   : > { %s744_s20 = sshll.u32 %s1338_s29, 2  ;;  %s746_s26 = sshll.u32 %s1338_s29, 3  ;;  %789 = vmatpush3.bf16.msra.mxu1 %v887_v8  ;;  %v893_v14 = vld [vmem:[#allocation5 + $0x18] sm:$0xff]   ;;  %v895_v16 = vld [vmem:[#allocation5 + $0x20] sm:$0xff]   ;;  %v896_v17 = vld [vmem:[#allocation5 + $0x68] sm:$0xff]  }
  0x5a   : > { %s321_s8 = scalar_lea.vmem %s1308_s0, %s744_s20  ;;  %s327_s18 = scalar_lea.vmem %s1309_s1, %s746_s26  ;;  %790 = vmatprep.subr.bf16.mxu1 %v888_v9  ;;  %v897_v18 = vld [vmem:[#allocation5 + $0x28] sm:$0xff]   ;;  %v898_v19 = vld [vmem:[#allocation5 + $0x70] sm:$0xff]   ;;  %v900_v21 = vld [vmem:[#allocation5 + $0x78] sm:$0xff]  }
  0x5b   : > { %v885_v4 = vld [vmem:[%s321_s8] sm:$0xff]   ;;  %v401_v6 = vld [vmem:[%s327_s18 + $0x8] sm:$0xff]  ;;  %813 = vmatpush3.bf16.msra.mxu0 %v884_v3  ;;  %s1330_s20 = sshll.u32 %s1223_s12, 3  ;;  %s612_s8 = scalar_lea.sflag [#allocation4], %s1223_s12 }
  0x5c   : > { %v400_v5 = vld [vmem:[%s327_s18] sm:$0xff]  ;;  %v901_v22 = vld [vmem:[#allocation5 + $0x38] sm:$0xff]   ;;  %s316_s26 = scalar_lea.vmem [#allocation7], %s1330_s20 }
  0x5d   : > { %404 = vperm.xlu0 %882, %v400_v5   ;;  %791 = vmatpush3.bf16.msra.mxu1 %v889_v10  ;;  %v899_v20 = vld [vmem:[#allocation5 + $0x30] sm:$0xff]   ;;  %s625_s27 = sshll.u32 %s316_s26, 4  ;;  %s1264_s27 = int_to_ptr.vmem [resolvable:$true] %s625_s27 }
  0x5e   : > { %815 = vmatmul.mubr.msk.bf16.vlgmr.msra.gmra.mrb[0].mxu0 %vm355_vm1, %v885_v4  ;;  %792 = vmatprep.subr.bf16.mxu1 %v890_v11  ;;  %v902_v23 = vld [vmem:[%s1229_s11] sm:$0xff]   ;;  %s779_s11 = sshll.u32 %s1099_s25, 7  ;;  %s961_s15 = scalar_lea.vmem %s1264_s27, 128 }
  0x5f   : > { %590 = vmatprep.mubr.bf16.mxu1 %v902_v23  ;;  %v752_v34 = vld [vmem:[%s1313_s5] ss:$0 sm:$0xff]  ;;  %s1262_s30 = scalar_lea.hbm %s1314_s6, %s779_s11  ;;  %p962_p6 = scmp.ne.s32.totalorder %s1264_s27, %s961_s15 }
  0x60   : > { %s1040_s25 = smov [#allocation7]  }
  0x61   : > { %409 = vperm.xlu0 %882, %v401_v6   ;;  %793 = vmatpush3.bf16.msra.mxu1 %v891_v12  ;;  %p963_p8 = pnand %p962_p6, %p1172_p12  ;;  %s965_s16 = sshll.u32 %s1040_s25, 4  ;;  %s966_s16 = int_to_ptr.vmem [resolvable:$false] %s965_s16 }
  0x62   : > { %794 = vmatprep.subr.bf16.mxu1 %v892_v13  ;;  %s967_s18 = scalar_lea.vmem %s966_s16, 256  ;;  %p968_p13 = scmp.lt.s32.totalorder %s1264_s27, %s966_s16 }
  0x63   : > { %p964_p10 = pneg %p963_p8  ;;  %p969_p3 = scmp.lt.s32.totalorder %s967_s18, %s961_s15 }
  0x65   : > { %795 = vmatpush3.bf16.msra.mxu1 %v893_v14  ;;  %p970_p7 = por %p969_p3, %p968_p13 }
  0x66   : > { %796 = vmatprep.subr.bf16.mxu1 %v894_v15 }
  0x67   : > { %p971_p9 = pnand %p970_p7, %p964_p10 }
  0x69   : > { %797 = vmatpush3.bf16.msra.mxu1 %v895_v16 }
  0x6a   : > { %798 = vmatprep.subr.bf16.mxu1 %v896_v17 }
  0x6d   : > { %799 = vmatpush3.bf16.msra.mxu1 %v897_v18 }
  0x6e   : > { %800 = vmatprep.subr.bf16.mxu1 %v898_v19 }
  0x71   : > { %801 = vmatpush3.bf16.msra.mxu1 %v899_v20 }
  0x72   : > { %802 = vmatprep.subr.bf16.mxu1 %v900_v21 }
  0x75   : > { %803 = vmatpush3.bf16.msra.mxu1 %v901_v22 }
  0xdc   : > { %v405_v24 = vpop.permute.xlu0 %404 }
  0xe0   : > { %v410_v27 = vpop.permute.xlu0 %409 }
 0x131   : > { %v393_v25 = vpop.f32.mrb[0].mxu0 }
 0x132   : > { %v816_v26 = vpop.f32.mrb[1].mxu0  ;;  %v412_v29 = vmul.f32 %v405_v24, %v393_v25 }
 0x133   : > { %v396_v28 = vpop.f32.mrb[2].mxu0 }
 0x134   : > { %v413_v30 = vmul.f32 %v410_v27, %v396_v28  ;;  %v817_v31 = vpop.f32.mrb[3].mxu0 }
 0x136   : > { %v414_v32 = vpack.c.bf16 %v413_v30, %v412_v29 }
 0x138   : > { %591 = vmatmul.mubr.bf16.vlgmr.msra.gmra.mrb[0].mxu1 %v414_v32 }
 0x20b   : > { %v804_v33 = vpop.f32.mrb[0].mxu1 }
 0x20c   : > { %v805_v35 = vpop.f32.mrb[1].mxu1 }
 0x20d   : > { %v806_v36 = vadd.f32 %v805_v35, %v804_v33  ;;  %v807_v37 = vpop.f32.mrb[2].mxu1 }
 0x20e   : > { %v808_v38 = vpop.f32.mrb[3].mxu1 }
 0x20f   : > { %v593_v39 = vadd.f32 %v806_v36, %v752_v34  ;;  %v809_v40 = vadd.f32 %v808_v38, %v807_v37 }
 0x211   : > { %v596_v41 = vadd.f32 %v809_v40, %v752_v34  ;;  %v599_v42 = vmax.f32 %v593_v39, 0.0 }
 0x213   : > { %v600_v43 = vmax.f32 %v596_v41, 0.0 }
 0x215   : > { %v783_v44 = vpack.c.bf16 %v600_v43, %v599_v42 }
 0x217   : > { %784 = vst [vmem:[%s316_s26] sm:$0xff] %v783_v44  }
 0x218   : > { %974 = shalt.err (!%p971_p9)
}
 0x219   : > { %s975_s7 = scalar_lea.hbm %s1262_s30, 128  ;;  %s979_s11 = scalar_lea.hbm %s1314_s6, 256 }
 0x21a   : > { %p976_p1 = scmp.ne.s32.totalorder %s1262_s30, %s975_s7  ;;  %p980_p11 = scmp.lt.u32.totalorder %s1262_s30, %s1314_s6 }
 0x21b   : > { %p981_p2 = scmp.lt.u32.totalorder %s979_s11, %s975_s7  ;;  %p983_p6 = scmp.lt.u32.totalorder %s975_s7, %s1262_s30 }
 0x21c   : > { %p977_p0 = pnand %p976_p1, %p1172_p12 }
 0x21d   : > { %p982_p4 = por %p981_p2, %p980_p11 }
 0x21e   : > { %p978_p5 = pneg %p977_p0 }
 0x21f   : > { %p984_p8 = por %p983_p6, %p982_p4 }
 0x221   : > { %p985_p10 = pnand %p984_p8, %p978_p5 }
 0x223   : > { %988 = shalt.err (!%p985_p10)
}
 0x224   : > { %s1041_s19 = smov 64   ;;  %s1042_s10 = smov 4  }
 0x225   : > { %824 = dma.vmem_to_hbm [thread:$0]  (%p1172_p12), %s1264_s27, 128, %s1262_s30, %s612_s8, %s1041_s19, %s1041_s19, %s1042_s10  }
 0x226 PF: > { %s640_s15 = sand.u32 1, %s1019_s21   ;;  %p1331_p13 = scmp.ne.s32.totalorder %s1320_s28, 0 }
 0x227   : > { %p1332_p3 = scmp.ge.s32.totalorder %s1031_s24, 2  ;;  %s641_s25 = scalar_lea.sflag [#allocation4], %s640_s15 }
 0x229   : > { %p835_p7 = pnand %p1332_p3, %p1331_p13 }
 0x22b   : > { %1014 = dma.done.wait (!%p835_p7), %s641_s25, 128  }
 0x22c   : > { %1016 = vsyncadd (!%p835_p7), %s641_s25, 4294967168  ;;  %p20_p9 = scmp.ge.s32.totalorder %s1134_s9, 4   ;;  %s1333_s21 = smov %s1023_s22 }
 0x22d   : > { %s1334_s22 = smov %s1027_s23  ;;  %s1335_s23 = smov %s1168_s13 }
 0x22e   : > { %s1336_s24 = smov %s1134_s9  ;;  %22 = sbr.rel (!%p20_p9) target bundleno = 6 (0x6), region = 99 }
 0x235   :  { %646 = vsyncpa [#allocation3], 1 }
 0x236   :  { %648 = vsyncpa [#allocation3 + $0x1], 1 }
 0x237   :  { %649 = vsyncpa [#allocation6], 1 }
 0x238   :  { %650 = vsyncpa [#allocation4], 1 }
 0x239   :  { %652 = vsyncpa [#allocation4 + $0x1], 1 }

</bundles_post_ra>
